<compile_context>
chip_gen: v5e
topology: v5e:2x2
jax: 0.10.0
libtpu: 0.0.40
codegen_flags: <defaults>
</compile_context>

<pallas_src>
import functools

import jax
import jax.numpy as jnp
from jax import lax
from jax.experimental import pallas as pl
from jax.experimental.pallas import tpu as pltpu

IGNORE_INDEX = -100


def _round_up(x: int, m: int) -> int:
    return ((x + m - 1) // m) * m


def _cdiv(a: int, b: int) -> int:
    return -(-a // b)


def _lce_lse_kernel(e_ref, c_ref, *rest, softcap, has_pad):
    """Online logsumexp over the vocab axis of logits = E @ C^T.

    Grid = (token_blocks, vocab_blocks); vocab is the inner reduction axis
    (running max / sum-exp held in VMEM scratch, finalized on the last step).
    The target-logit gather is hoisted to the wrapper, so the hot loop is just
    the MXU matmul plus the online-softmax update.
    """
    if has_pad:
        pad_ref, lse_ref, m_sc, l_sc = rest
    else:
        pad_ref = None
        lse_ref, m_sc, l_sc = rest

    j = pl.program_id(1)

    @pl.when(j == 0)
    def _():
        m_sc[...] = jnp.full_like(m_sc, -jnp.inf)
        l_sc[...] = jnp.zeros_like(l_sc)

    # (tn, D) . (tv, D) contracted on D -> (tn, tv) on the MXU, f32 accumulate.
    logits = lax.dot_general(
        e_ref[...], c_ref[...],
        dimension_numbers=(((1,), (1,)), ((), ())),
        preferred_element_type=jnp.float32,
    )
    if softcap is not None:
        logits = float(softcap) * jnp.tanh(logits * (1.0 / float(softcap)))
    if pad_ref is not None:
        # Precomputed additive column bias: 0 for valid vocab columns, -inf for
        # the zero-padded tail of C.  One VPU add per element (only emitted when
        # V is not a multiple of tv) instead of iota+compare+select per step.
        logits = logits + pad_ref[...]          # (1, tv) broadcast over rows

    m_prev = m_sc[...]
    m_new = jnp.maximum(m_prev, jnp.max(logits, axis=-1, keepdims=True))
    l_sc[...] = jnp.exp(m_prev - m_new) * l_sc[...] + jnp.sum(
        jnp.exp(logits - m_new), axis=-1, keepdims=True
    )
    m_sc[...] = m_new

    @pl.when(j == pl.num_programs(1) - 1)
    def _():
        lse_ref[...] = m_sc[...] + jnp.log(l_sc[...])


def _tpu_vmem_and_kind():
    kind = ""
    try:
        kind = jax.devices()[0].device_kind.lower()
    except Exception:
        pass
    cap = None
    try:
        info = pltpu.get_tpu_info()
        cap = int(getattr(info, "vmem_capacity_bytes", 0)) or None
    except Exception:
        cap = None
    if cap is None:
        cap = (128 << 20) if ("v5" in kind or "v6" in kind) else (64 << 20)
    return cap, kind


def _select_tiles(n, d, v, itemsize, tn_user, tv_user):
    """Pick (tn, tv) and the scoped-VMEM limit for the current TPU generation."""
    cap, kind = _tpu_vmem_and_kind()
    pack = max(8, 32 // itemsize)          # sublane packing of the matmul dtype
    if cap >= (100 << 20):                 # v5e / v6e: 128 MiB VMEM
        is_v5 = "v5" in kind
        default_tv = 512 if is_v5 else 1024
        tn_cap = 1024 if is_v5 else 2048
        budget = 96 << 20
        limit_cap = 100 << 20
    else:                                  # v7x: 64 MiB VMEM per TensorCore
        default_tv = 1024
        tn_cap = 768
        budget = 44 << 20
        limit_cap = 52 << 20

    tv = default_tv if tv_user is None else tv_user
    tv = max(128, min(_round_up(tv, 128), _round_up(v, 128)))
    if tv_user is None:
        # Don't let the double-buffered C tile eat more than half the budget.
        # TODO(synk): for D >= 8K on v7x, add a k-axis over D instead.
        while tv > 128 and 2 * tv * d * itemsize > budget // 2:
            tv -= 128
    v_pad = _round_up(v, tv)

    # Bytes scaling with tn: double-buffered E tile, lane-padded (tn,1) output
    # block (double-buffered), lane-padded m/l scratch, and ~3 live (tn,tv) f32
    # intermediates (logits / exp / temporaries).
    per_tn = 2 * d * itemsize + 2 * 128 * 4 + 2 * 128 * 4 + 3 * tv * 4
    fixed = 2 * tv * d * itemsize + 2 * 8 * tv * 4   # C tiles + pad-bias block
    if tn_user is None:
        tn = max(pack, (budget - fixed) // per_tn)
        tn = min(tn, tn_cap)
    else:
        tn = max(pack, tn_user)
    tn = int(tn)

    num_blocks = _cdiv(n, tn)
    if num_blocks == 1 and n >= 256:
        # Keep >= 2 token blocks so the "parallel" axis can feed both v7x
        # TensorCores (harmless elsewhere: one extra ~0.35us grid step).
        num_blocks = 2
    tn = _round_up(_cdiv(n, num_blocks), pack)
    n_pad = tn * num_blocks

    vmem_need = fixed + tn * per_tn
    vmem_limit = int(min(limit_cap, max(32 << 20, vmem_need + (8 << 20))))
    return tn, tv, n_pad, v_pad, vmem_limit


def linear_cross_entropy(
    e: jax.Array,
    c: jax.Array,
    targets: jax.Array,
    *,
    ignore_index: int = IGNORE_INDEX,
    softcap: float | None = None,
    reduction: str = "mean",
    shift: bool = False,
    filter_eps=None,   # backward-pass gradient-filtering knob; no-op in forward
    impl=None,         # dispatch knob (cce / torch_compile); single Pallas path
    tn: int | None = None,
    tv: int | None = None,
) -> jax.Array:
    """JAX/Pallas equivalent of cut_cross_entropy.linear_cross_entropy (fwd)."""
    del filter_eps, impl
    if shift:
        e = e[..., :-1, :]
        targets = targets[..., 1:]

    d = e.shape[-1]
    e2 = e.reshape(-1, d)
    tgt = targets.reshape(-1).astype(jnp.int32)
    n, v = e2.shape[0], c.shape[0]

    # Unify the matmul dtype towards the *narrower* operand: C (V x D) is the
    # dominant HBM stream (re-read N/tn times), so never upcast it.  Note this
    # intentionally runs the matmul at the narrower precision; accumulation
    # stays f32 on the MXU via preferred_element_type.
    if e2.dtype != c.dtype:
        if jnp.dtype(c.dtype).itemsize < jnp.dtype(e2.dtype).itemsize:
            e2 = e2.astype(c.dtype)
        else:
            c = c.astype(e2.dtype)
    itemsize = jnp.dtype(e2.dtype).itemsize

    # Target logit hoisted out of the kernel: O(N*D) work (negligible vs N*V*D)
    # and removes the per-tile iota/compare/select + one cross-lane reduction.
    valid = tgt != ignore_index
    tgt_safe = jnp.where(valid, tgt, 0)
    c_tgt = jnp.take(c, tgt_safe, axis=0)                          # (N, D)
    t_logit = jnp.einsum("nd,nd->n", e2, c_tgt,
                         preferred_element_type=jnp.float32)       # (N,)
    if softcap is not None:
        t_logit = float(softcap) * jnp.tanh(t_logit / float(softcap))

    tn_, tv_, n_pad, v_pad, vmem_limit = _select_tiles(n, d, v, itemsize, tn, tv)

    if n_pad != n:
        e2 = jnp.pad(e2, ((0, n_pad - n), (0, 0)))
    if v_pad != v:
        c = jnp.pad(c, ((0, v_pad - v), (0, 0)))

    num_token_blocks = n_pad // tn_
    num_vocab_blocks = v_pad // tv_
    has_pad = v_pad != v

    inputs = [e2, c]
    in_specs = [
        pl.BlockSpec((tn_, d), lambda i, j: (i, 0)),   # E: resident across j
        pl.BlockSpec((tv_, d), lambda i, j: (j, 0)),   # C: streamed over j
    ]
    if has_pad:
        col = jnp.arange(v_pad, dtype=jnp.int32).reshape(num_vocab_blocks, 1, tv_)
        pad_bias = jnp.where(col < v, 0.0, -jnp.inf).astype(jnp.float32)
        inputs.append(pad_bias)
        in_specs.append(pl.BlockSpec((None, 1, tv_), lambda i, j: (j, 0, 0)))

    kernel = functools.partial(_lce_lse_kernel, softcap=softcap, has_pad=has_pad)

    lse = pl.pallas_call(
        kernel,
        out_shape=jax.ShapeDtypeStruct((n_pad, 1), jnp.float32),
        grid_spec=pltpu.PrefetchScalarGridSpec(
            num_scalar_prefetch=0,
            grid=(num_token_blocks, num_vocab_blocks),
            in_specs=in_specs,
            out_specs=pl.BlockSpec((tn_, 1), lambda i, j: (i, 0)),
            scratch_shapes=[
                pltpu.VMEM((tn_, 1), jnp.float32),   # running max
                pltpu.VMEM((tn_, 1), jnp.float32),   # running sum-exp
            ],
        ),
        compiler_params=pltpu.CompilerParams(
            dimension_semantics=("parallel", "arbitrary"),
            vmem_limit_bytes=vmem_limit,
        ),
    )(*inputs)

    lse = lse.reshape(-1)[:n]
    nll = jnp.where(valid, lse - t_logit, 0.0)

    if reduction == "mean":
        denom = jnp.maximum(jnp.sum(valid.astype(jnp.float32)), 1.0)
        return jnp.sum(nll) / denom
    if reduction == "sum":
        return jnp.sum(nll)
    if reduction == "none":
        return nll.reshape(targets.shape)
    raise NotImplementedError(reduction)


class LinearCrossEntropy:
    """Forward-only mirror of cut_cross_entropy.LinearCrossEntropy."""

    def __init__(
        self,
        ignore_index: int = IGNORE_INDEX,
        softcap: float | None = None,
        reduction: str = "mean",
        filter_eps="high",   # gradient-only knob; unused in forward
        shift: bool = False,
        impl: str = "cce",
    ):
        self.ignore_index = ignore_index
        self.softcap = softcap
        self.reduction = reduction
        self.filter_eps = filter_eps
        self.shift = shift
        self.impl = impl
        # TODO(synk): filter_eps / impl only affect backward-pass gradient
        # filtering and implementation dispatch in the reference.

    def __call__(self, e, c, targets):
        return linear_cross_entropy(
            e, c, targets,
            ignore_index=self.ignore_index,
            softcap=self.softcap,
            reduction=self.reduction,
            shift=self.shift,
        )


def _reference(e, c, targets, ignore_index=IGNORE_INDEX, softcap=None):
    d = e.shape[-1]
    e2 = e.reshape(-1, d).astype(jnp.float32)
    tgt = targets.reshape(-1)
    logits = e2 @ c.astype(jnp.float32).T
    if softcap is not None:
        logits = softcap * jnp.tanh(logits / softcap)
    lse = jax.nn.logsumexp(logits, axis=-1)
    tgt_safe = jnp.where(tgt == ignore_index, 0, tgt)
    tl = jnp.take_along_axis(logits, tgt_safe[:, None], axis=-1)[:, 0]
    nll = lse - tl
    valid = tgt != ignore_index
    return jnp.sum(jnp.where(valid, nll, 0.0)) / jnp.maximum(
        jnp.sum(valid.astype(jnp.float32)), 1.0)


if __name__ == "__main__":
    key = jax.random.PRNGKey(0)
    k_e, k_c, k_t, k_e2, k_c2, k_t2 = jax.random.split(key, 6)

    # Case 1: vocab NOT a multiple of 128 -> exercises the padded-column path
    # and one ignored target position.
    batch, seq, hidden, vocab = 2, 4, 32, 250
    e = jax.random.normal(k_e, (batch, seq, hidden), dtype=jnp.float32)
    c = jax.random.normal(k_c, (vocab, hidden), dtype=jnp.float32) * 0.05
    targets = jax.random.randint(k_t, (batch, seq), 0, vocab, dtype=jnp.int32)
    targets = targets.at[0, 0].set(IGNORE_INDEX)

    loss = LinearCrossEntropy()(e, c, targets)
    jax.block_until_ready(loss)
    ref = _reference(e, c, targets)
    assert jnp.allclose(loss, ref, rtol=1e-5, atol=1e-4), (loss, ref)

    # Case 2: softcap + vocab multiple of 128 (no pad-bias input) + token
    # count that is not a multiple of the sublane packing (token padding).
    batch2, seq2, hidden2, vocab2 = 2, 3, 32, 256
    e_b = jax.random.normal(k_e2, (batch2, seq2, hidden2), dtype=jnp.float32)
    c_b = jax.random.normal(k_c2, (vocab2, hidden2), dtype=jnp.float32) * 0.05
    t_b = jax.random.randint(k_t2, (batch2, seq2), 0, vocab2, dtype=jnp.int32)
    loss2 = LinearCrossEntropy(softcap=30.0)(e_b, c_b, t_b)
    jax.block_until_ready(loss2)
    ref2 = _reference(e_b, c_b, t_b, softcap=30.0)
    assert jnp.allclose(loss2, ref2, rtol=1e-5, atol=1e-4), (loss2, ref2)

    print("KERNEL_OK")
</pallas_src>

<mosaic_0001>
module attributes {stable_mosaic.version = 11 : i64} {
  func.func @_lce_lse_kernel(%arg0: i32, %arg1: i32, %arg2: memref<8x32xf32, #tpu.memory_space<vmem>>, %arg3: memref<256x32xf32, #tpu.memory_space<vmem>>, %arg4: memref<1x1x256xf32, #tpu.memory_space<vmem>>, %arg5: memref<8x1xf32, #tpu.memory_space<vmem>>, %arg6: memref<8x1xf32, #tpu.memory_space<vmem>>, %arg7: memref<8x1xf32, #tpu.memory_space<vmem>>) attributes {dimension_semantics = [#tpu.dimension_semantics<parallel>, #tpu.dimension_semantics<arbitrary>], iteration_bounds = array<i64: 1, 1>, scalar_prefetch = 0 : i64, scratch_operands = 2 : i64, tpu.core_type = #tpu.core_type<tc>, window_params = [{transform_indices = @transform_0, window_bounds = array<i64: 8, 32>}, {transform_indices = @transform_1, window_bounds = array<i64: 256, 32>}, {transform_indices = @transform_2, window_bounds = array<i64: 1, 1, 256>}, {transform_indices = @transform_3, window_bounds = array<i64: 8, 1>}]} {
    %c0_i32 = arith.constant 0 : i32
    %0 = arith.cmpi eq, %arg1, %c0_i32 : i32
    %1 = arith.extui %0 : i1 to i32
    %c0_i32_0 = arith.constant 0 : i32
    %2 = arith.cmpi ne, %1, %c0_i32_0 : i32
    scf.if %2 {
      %cst_19 = arith.constant 0xFF800000 : f32
      %29 = vector.broadcast %cst_19 : f32 to vector<8x1xf32>
      %c0_20 = arith.constant 0 : index
      %c0_21 = arith.constant 0 : index
      %30 = vector.load %arg6[%c0_20, %c0_21] : memref<8x1xf32, #tpu.memory_space<vmem>>, vector<8x1xf32>
      tpu.vector_store %arg6[%c0_20, %c0_21], %29 {strides = array<i32>} : memref<8x1xf32, #tpu.memory_space<vmem>>, vector<8x1xf32>,
      %cst_22 = arith.constant 0.000000e+00 : f32
      %31 = vector.broadcast %cst_22 : f32 to vector<8x1xf32>
      %c0_23 = arith.constant 0 : index
      %c0_24 = arith.constant 0 : index
      %32 = vector.load %arg7[%c0_23, %c0_24] : memref<8x1xf32, #tpu.memory_space<vmem>>, vector<8x1xf32>
      tpu.vector_store %arg7[%c0_23, %c0_24], %31 {strides = array<i32>} : memref<8x1xf32, #tpu.memory_space<vmem>>, vector<8x1xf32>,
    } else {
    }
    %c0 = arith.constant 0 : index
    %c0_1 = arith.constant 0 : index
    %3 = vector.load %arg2[%c0, %c0_1] : memref<8x32xf32, #tpu.memory_space<vmem>>, vector<8x32xf32>
    %c0_2 = arith.constant 0 : index
    %c0_3 = arith.constant 0 : index
    %4 = vector.load %arg3[%c0_2, %c0_3] : memref<256x32xf32, #tpu.memory_space<vmem>>, vector<256x32xf32>
    %cst = arith.constant dense<0.000000e+00> : vector<8x256xf32>
    %5 = tpu.matmul %3, %4, %cst {dimension_numbers = #tpu.dot_dimension_numbers<[1], [1], [0], [0], [0, 0, 1, 0], [], []>} : vector<8x32xf32>, vector<256x32xf32>, vector<8x256xf32> -> vector<8x256xf32>
    %c0_4 = arith.constant 0 : index
    %c0_5 = arith.constant 0 : index
    %c0_6 = arith.constant 0 : index
    %6 = vector.load %arg4[%c0_4, %c0_5, %c0_6] : memref<1x1x256xf32, #tpu.memory_space<vmem>>, vector<1x1x256xf32>
    %7 = vector.shape_cast %6 : vector<1x1x256xf32> to vector<1x256xf32>
    %8 = vector.broadcast %7 : vector<1x256xf32> to vector<8x256xf32>
    %9 = arith.addf %5, %8 : vector<8x256xf32>
    %c0_7 = arith.constant 0 : index
    %c0_8 = arith.constant 0 : index
    %10 = vector.load %arg6[%c0_7, %c0_8] : memref<8x1xf32, #tpu.memory_space<vmem>>, vector<8x1xf32>
    %cst_9 = arith.constant dense<0xFF800000> : vector<8xf32>
    %11 = vector.multi_reduction <maximumf>, %9, %cst_9 [1] : vector<8x256xf32> to vector<8xf32>
    %12 = vector.shape_cast %11 : vector<8xf32> to vector<8x1xf32>
    %13 = arith.maximumf %10, %12 : vector<8x1xf32>
    %14 = arith.subf %10, %13 : vector<8x1xf32>
    %15 = math.exp %14 : vector<8x1xf32>
    %c0_10 = arith.constant 0 : index
    %c0_11 = arith.constant 0 : index
    %16 = vector.load %arg7[%c0_10, %c0_11] : memref<8x1xf32, #tpu.memory_space<vmem>>, vector<8x1xf32>
    %17 = arith.mulf %15, %16 : vector<8x1xf32>
    %18 = vector.broadcast %13 : vector<8x1xf32> to vector<8x256xf32>
    %19 = arith.subf %9, %18 : vector<8x256xf32>
    %20 = math.exp %19 : vector<8x256xf32>
    %cst_12 = arith.constant dense<0.000000e+00> : vector<8xf32>
    %21 = vector.multi_reduction <add>, %20, %cst_12 [1] : vector<8x256xf32> to vector<8xf32>
    %22 = vector.shape_cast %21 : vector<8xf32> to vector<8x1xf32>
    %23 = arith.addf %17, %22 : vector<8x1xf32>
    %c0_13 = arith.constant 0 : index
    %c0_14 = arith.constant 0 : index
    %24 = vector.load %arg7[%c0_13, %c0_14] : memref<8x1xf32, #tpu.memory_space<vmem>>, vector<8x1xf32>
    tpu.vector_store %arg7[%c0_13, %c0_14], %23 {strides = array<i32>} : memref<8x1xf32, #tpu.memory_space<vmem>>, vector<8x1xf32>,
    %c0_15 = arith.constant 0 : index
    %c0_16 = arith.constant 0 : index
    %25 = vector.load %arg6[%c0_15, %c0_16] : memref<8x1xf32, #tpu.memory_space<vmem>>, vector<8x1xf32>
    tpu.vector_store %arg6[%c0_15, %c0_16], %13 {strides = array<i32>} : memref<8x1xf32, #tpu.memory_space<vmem>>, vector<8x1xf32>,
    %c0_i32_17 = arith.constant 0 : i32
    %26 = arith.cmpi eq, %arg1, %c0_i32_17 : i32
    %27 = arith.extui %26 : i1 to i32
    %c0_i32_18 = arith.constant 0 : i32
    %28 = arith.cmpi ne, %27, %c0_i32_18 : i32
    scf.if %28 {
      %c0_19 = arith.constant 0 : index
      %c0_20 = arith.constant 0 : index
      %29 = vector.load %arg6[%c0_19, %c0_20] : memref<8x1xf32, #tpu.memory_space<vmem>>, vector<8x1xf32>
      %c0_21 = arith.constant 0 : index
      %c0_22 = arith.constant 0 : index
      %30 = vector.load %arg7[%c0_21, %c0_22] : memref<8x1xf32, #tpu.memory_space<vmem>>, vector<8x1xf32>
      %31 = math.log %30 : vector<8x1xf32>
      %32 = arith.addf %29, %31 : vector<8x1xf32>
      %c0_23 = arith.constant 0 : index
      %c0_24 = arith.constant 0 : index
      %33 = vector.load %arg5[%c0_23, %c0_24] : memref<8x1xf32, #tpu.memory_space<vmem>>, vector<8x1xf32>
      tpu.vector_store %arg5[%c0_23, %c0_24], %32 {strides = array<i32>} : memref<8x1xf32, #tpu.memory_space<vmem>>, vector<8x1xf32>,
    } else {
    }
    return
  }
  func.func @transform_0(%arg0: i32, %arg1: i32) -> (i32, i32) {
    %c0_i32 = arith.constant 0 : i32
    %c0_i32_0 = arith.constant 0 : i32
    return %arg0, %c0_i32 : i32, i32
  }
  func.func @transform_1(%arg0: i32, %arg1: i32) -> (i32, i32) {
    %c0_i32 = arith.constant 0 : i32
    %c0_i32_0 = arith.constant 0 : i32
    return %arg1, %c0_i32 : i32, i32
  }
  func.func @transform_2(%arg0: i32, %arg1: i32) -> (i32, i32, i32) {
    %c0_i32 = arith.constant 0 : i32
    %c0_i32_0 = arith.constant 0 : i32
    %c0_i32_1 = arith.constant 0 : i32
    return %arg1, %c0_i32, %c0_i32_0 : i32, i32, i32
  }
  func.func @transform_3(%arg0: i32, %arg1: i32) -> (i32, i32) {
    %c0_i32 = arith.constant 0 : i32
    %c0_i32_0 = arith.constant 0 : i32
    return %arg0, %c0_i32 : i32, i32
  }
}

</mosaic_0001>

<bundles_post_ra>
// kernel: tpu_custom_call.1
= control target key start
LH: loop header
LB: loop body
LE: loop exit
PB: predicated region body
PF: predicated region fallthrough
CT: control target
= control target key end

     0   :  { %vm60_vm0 = vcmask 261120   ;;  %vm18_vm1 = vcmask 7168   ;;  %v287_v33 = vmov -inf   ;;  %v288_v42 = vmov 0   ;;  %s454_s1 = inlined_call_operand.vmem [shape: f32[256,32], index: 1, kind: input, shape index: {}]   ;;  %s455_s0 = inlined_call_operand.vmem [shape: f32[8,32], index: 0, kind: input, shape index: {}]   ;;  %s456_s2 = inlined_call_operand.vmem [shape: f32[1,1,256], index: 2, kind: input, shape index: {}]   ;;  %s457_s3 = inlined_call_operand.vmem [shape: f32[8,1], index: 3, kind: output, shape index: {}]  }
   0x1   :  { %v37_v0 = vld [vmem:[%s454_s1 + $0x78] sm:$0xff]  ;;  %v36_v2 = vld [vmem:[%s454_s1 + $0x70] sm:$0xff]  ;;  %v35_v4 = vld [vmem:[%s454_s1 + $0x68] sm:$0xff]  ;;  %19 = vst.msk [vmem:[#allocation2] sm:$0xff] %vm18_vm1, %v287_v33  ;;  %278 = vset.pattern.permute.xlu0 %v288_v42  ;;  %v289_v43 = vmov 0.0  }
   0x2   :  { %v53_v1 = vld [vmem:[%s454_s1 + $0xf8] sm:$0xff]  ;;  %241 = vmatpush.xpose.msk.msra.mxu0 %vm60_vm0, %v37_v0  ;;  %v52_v3 = vld [vmem:[%s454_s1 + $0xf0] sm:$0xff]  ;;  %v51_v5 = vld [vmem:[%s454_s1 + $0xe8] sm:$0xff]  ;;  %20 = vst.msk [vmem:[#allocation3] sm:$0xff] %vm18_vm1, %v289_v43 }
   0x3   :  { %258 = vmatpush.xpose.msk.msra.mxu1 %vm60_vm0, %v53_v1  ;;  %v34_v6 = vld [vmem:[%s454_s1 + $0x60] sm:$0xff]  ;;  %v33_v8 = vld [vmem:[%s454_s1 + $0x58] sm:$0xff]  ;;  %v32_v10 = vld [vmem:[%s454_s1 + $0x50] sm:$0xff] }
   0x4   :  { %v50_v7 = vld [vmem:[%s454_s1 + $0xe0] sm:$0xff]  ;;  %v49_v9 = vld [vmem:[%s454_s1 + $0xd8] sm:$0xff]  ;;  %v48_v11 = vld [vmem:[%s454_s1 + $0xd0] sm:$0xff] }
   0x5   :  { %v31_v12 = vld [vmem:[%s454_s1 + $0x48] sm:$0xff]  ;;  %v30_v14 = vld [vmem:[%s454_s1 + $0x40] sm:$0xff]  ;;  %v29_v16 = vld [vmem:[%s454_s1 + $0x38] sm:$0xff] }
   0x6   :  { %242 = vmatpush.xpose.msk.msra.mxu0 %vm60_vm0, %v36_v2  ;;  %v47_v13 = vld [vmem:[%s454_s1 + $0xc8] sm:$0xff]  ;;  %v46_v15 = vld [vmem:[%s454_s1 + $0xc0] sm:$0xff]  ;;  %v45_v17 = vld [vmem:[%s454_s1 + $0xb8] sm:$0xff] }
   0x7   :  { %259 = vmatpush.xpose.msk.msra.mxu1 %vm60_vm0, %v52_v3  ;;  %v28_v18 = vld [vmem:[%s454_s1 + $0x30] sm:$0xff]  ;;  %v27_v20 = vld [vmem:[%s454_s1 + $0x28] sm:$0xff]  ;;  %v26_v22 = vld [vmem:[%s454_s1 + $0x20] sm:$0xff] }
   0x8   :  { %v44_v19 = vld [vmem:[%s454_s1 + $0xb0] sm:$0xff]  ;;  %v43_v21 = vld [vmem:[%s454_s1 + $0xa8] sm:$0xff]  ;;  %v42_v23 = vld [vmem:[%s454_s1 + $0xa0] sm:$0xff] }
   0x9   :  { %v25_v24 = vld [vmem:[%s454_s1 + $0x18] sm:$0xff]  ;;  %v24_v26 = vld [vmem:[%s454_s1 + $0x10] sm:$0xff]  ;;  %v23_v28 = vld [vmem:[%s454_s1 + $0x8] sm:$0xff] }
   0xa   :  { %243 = vmatpush.xpose.msk.msra.mxu0 %vm60_vm0, %v35_v4  ;;  %v41_v25 = vld [vmem:[%s454_s1 + $0x98] sm:$0xff]  ;;  %v40_v27 = vld [vmem:[%s454_s1 + $0x90] sm:$0xff]  ;;  %v39_v29 = vld [vmem:[%s454_s1 + $0x88] sm:$0xff] }
   0xb   :  { %260 = vmatpush.xpose.msk.msra.mxu1 %vm60_vm0, %v51_v5  ;;  %v22_v30 = vld [vmem:[%s454_s1] sm:$0xff]  ;;  %v208_v58 = vld [vmem:[#allocation3] sm:$0xff] }
   0xc   :  { %v38_v31 = vld [vmem:[%s454_s1 + $0x80] sm:$0xff] }
   0xd   :  { %v21_v32 = vld [vmem:[%s455_s0] sm:$0xff] }
   0xe   :  { %244 = vmatpush.xpose.msk.msra.mxu0 %vm60_vm0, %v34_v6  ;;  %v54_v34 = vld [vmem:[%s456_s2] sm:$0x3] }
   0xf   :  { %261 = vmatpush.xpose.msk.msra.mxu1 %vm60_vm0, %v50_v7  ;;  %v56_v35 = vperm.slane %v54_v34, 0  ;;  %v57_v36 = vperm.slane %v54_v34, 1  ;;  %v200_v44 = vld [vmem:[#allocation2] sm:$0xff] }
  0x12   :  { %245 = vmatpush.xpose.msk.msra.mxu0 %vm60_vm0, %v33_v8 }
  0x13   :  { %262 = vmatpush.xpose.msk.msra.mxu1 %vm60_vm0, %v49_v9 }
  0x16   :  { %246 = vmatpush.xpose.msk.msra.mxu0 %vm60_vm0, %v32_v10 }
  0x17   :  { %263 = vmatpush.xpose.msk.msra.mxu1 %vm60_vm0, %v48_v11 }
  0x1a   :  { %247 = vmatpush.xpose.msk.msra.mxu0 %vm60_vm0, %v31_v12 }
  0x1b   :  { %264 = vmatpush.xpose.msk.msra.mxu1 %vm60_vm0, %v47_v13 }
  0x1e   :  { %248 = vmatpush.xpose.msk.msra.mxu0 %vm60_vm0, %v30_v14 }
  0x1f   :  { %265 = vmatpush.xpose.msk.msra.mxu1 %vm60_vm0, %v46_v15 }
  0x22   :  { %249 = vmatpush.xpose.msk.msra.mxu0 %vm60_vm0, %v29_v16 }
  0x23   :  { %266 = vmatpush.xpose.msk.msra.mxu1 %vm60_vm0, %v45_v17 }
  0x26   :  { %250 = vmatpush.xpose.msk.msra.mxu0 %vm60_vm0, %v28_v18 }
  0x27   :  { %267 = vmatpush.xpose.msk.msra.mxu1 %vm60_vm0, %v44_v19 }
  0x2a   :  { %251 = vmatpush.xpose.msk.msra.mxu0 %vm60_vm0, %v27_v20 }
  0x2b   :  { %268 = vmatpush.xpose.msk.msra.mxu1 %vm60_vm0, %v43_v21 }
  0x2e   :  { %252 = vmatpush.xpose.msk.msra.mxu0 %vm60_vm0, %v26_v22 }
  0x2f   :  { %269 = vmatpush.xpose.msk.msra.mxu1 %vm60_vm0, %v42_v23 }
  0x32   :  { %253 = vmatpush.xpose.msk.msra.mxu0 %vm60_vm0, %v25_v24 }
  0x33   :  { %270 = vmatpush.xpose.msk.msra.mxu1 %vm60_vm0, %v41_v25 }
  0x36   :  { %254 = vmatpush.xpose.msk.msra.mxu0 %vm60_vm0, %v24_v26 }
  0x37   :  { %271 = vmatpush.xpose.msk.msra.mxu1 %vm60_vm0, %v40_v27 }
  0x3a   :  { %255 = vmatpush.xpose.msk.msra.mxu0 %vm60_vm0, %v23_v28 }
  0x3b   :  { %272 = vmatpush.xpose.msk.msra.mxu1 %vm60_vm0, %v39_v29 }
  0x3e   :  { %256 = vmatpush.xpose.msk.msra.mxu0 %vm60_vm0, %v22_v30 }
  0x3f   :  { %273 = vmatpush.xpose.msk.msra.mxu1 %vm60_vm0, %v38_v31 }
  0x41   :  { %257 = vmatmul.msk.f32.vlgmr.msra.gmra.mxu0 %vm60_vm0, %v21_v32 }
  0x42   :  { %274 = vmatmul.msk.f32.vlgmr.msra.gmra.mxu1 %vm60_vm0, %v21_v32 }
  0xbe   :  { %v177_v37 = vpop.f32.mrf.mxu0 }
  0xbf   :  { %v197_v38 = vpop.f32.mrf.mxu1  ;;  %v178_v39 = vadd.f32 %v177_v37, %v56_v35 }
  0xc0   :  { %v198_v40 = vadd.f32 %v197_v38, %v57_v36 }
  0xc2   :  { %v201_v41 = vmax.f32 %v178_v39, %v198_v40 }
  0xc4   :  { %202 = vmax.xlane.f32.xlu0 %v201_v41 }
 0x137   :  { %v203_v45 = vpop.xlane.xlu0 %202 }
 0x138   :  { %v204_v46 = vmax.f32 %v200_v44, %v203_v45 }
 0x13a   :  { %v205_v47 = vsub.f32 %v200_v44, %v204_v46  ;;  %227 = vst.msk [vmem:[#allocation2] sm:$0xff] %vm18_vm1, %v204_v46  ;;  %212 = vperm.xlu0 %278, %v204_v46  }
 0x13c   :  { %v206_v56 = vmul.f32 1.442695, %v205_v47 }
 0x141   :  { %v231_v1 = vld [vmem:[#allocation2] sm:$0xff] }
 0x1ac   :  { %v213_v48 = vpop.permute.xlu0 %212 }
 0x1ad   :  { %v215_v49 = vsub.f32 %v178_v39, %v213_v48  ;;  %v216_v50 = vsub.f32 %v198_v40, %v213_v48 }
 0x1af   :  { %v217_v51 = vmul.f32 1.442695, %v215_v49  ;;  %v219_v52 = vmul.f32 1.442695, %v216_v50 }
 0x1b1   :  { %279 = vpow2.f32 %v217_v51 }
 0x1b2   :  { %281 = vpow2.f32 %v219_v52 }
 0x1b3   :  { %283 = vpow2.f32 %v206_v56 }
 0x1b7   :  { %v280_v53 = vpop.eup %279 }
 0x1b8   :  { %v282_v54 = vpop.eup %281 }
 0x1b9   :  { %v221_v55 = vadd.f32 %v282_v54, %v280_v53  ;;  %v284_v57 = vpop.eup %283 }
 0x1ba   :  { %v209_v59 = vmul.f32 %v284_v57, %v208_v58 }
 0x1bb   :  { %222 = vadd.xlane.f32.xlu1 %v221_v55 }
 0x22e   :  { %v223_v60 = vpop.xlane.xlu1 %222 }
 0x22f   :  { %v224_v61 = vadd.f32 %v223_v60, %v209_v59 }
 0x231   :  { %226 = vst.msk [vmem:[#allocation3] sm:$0xff] %vm18_vm1, %v224_v61 }
 0x238   :  { %v232_v62 = vld [vmem:[#allocation3] sm:$0xff] }
 0x239   :  { %285 = vlog2.f32 %v232_v62 }
 0x23f   :  { %v286_v63 = vpop.eup %285 }
 0x240   :  { %v234_v0 = vmul.f32 0.6931472, %v286_v63 }
 0x242   :  { %v235_v2 = vadd.f32 %v234_v0, %v231_v1 }
 0x244   :  { %236 = vst.msk [vmem:[%s457_s3] sm:$0xff] %vm18_vm1, %v235_v2 }

</bundles_post_ra>
